<compile_context>
chip_gen: v7x
topology: tpu7x:2x2x1
jax: 0.10.0
libtpu: 0.0.40
codegen_flags: <defaults>
</compile_context>

<pallas_src>
import functools
import math

import jax
import jax.numpy as jnp
from jax import lax
from jax.experimental import pallas as pl
from jax.experimental.pallas import tpu as pltpu


_VMEM_LIMIT_BYTES = 48 * 1024 * 1024   # v7x-safe cap; raise on v5e/v6e (128 MiB VMEM)
_VMEM_FIT_BUDGET = 40 * 1024 * 1024    # target for the double-buffered working set


def _sublane_align(dtype) -> int:
    return {4: 8, 2: 16, 1: 32}.get(jnp.dtype(dtype).itemsize, 8)


def _pick_row_tile(dim, target, align, fits):
    """Row (sublane-dim) tile: full dim when small, else an align-multiple <=
    target; the grid is cdiv'd and Pallas masks the ragged edge."""
    if dim <= align:
        return dim
    if dim <= target and fits(dim):
        return dim
    t = max((min(target, dim) // align) * align, align)
    while t > align and not fits(t):
        t = max(((t // 2) // align) * align, align)
    return t


# ---------------------------------------------------------------------------
# Kernel 1: QKV projection with head-major output.
#   x_ref: (tm, C)   w_ref: (H, C, 3*hd) resident   o_ref: (H, tm, 3*hd)
# ---------------------------------------------------------------------------
def _qkv_proj_kernel(x_ref, w_ref, o_ref, *, num_heads):
    x = x_ref[...]
    for h in range(num_heads):      # small static loop; each dot streams to its own slab
        o_ref[h] = jnp.dot(
            x, w_ref[h], preferred_element_type=jnp.float32
        ).astype(o_ref.dtype)


# ---------------------------------------------------------------------------
# Kernel 2: fused multi-head attention + output projection for one (b, q-tile).
#   q_ref  : (H, tq, 3*hd)   queries of this tile (head-major)
#   kv_ref : (H, N,  3*hd)   all keys/values of this batch element (resident across q-tiles)
#   wp_ref : (H, hd, C_out)  per-head projection weight (pre-arranged in wrapper)
#   b_ref  : (1, C_out)
#   o_ref  : (tq, C_out)     lane-dense output tile
#   acc_ref: (tq, C_out) f32 VMEM scratch accumulator
# ---------------------------------------------------------------------------
def _mha_proj_kernel(q_ref, kv_ref, wp_ref, b_ref, o_ref, acc_ref, *,
                     num_heads, head_dim, scale, approx_recip):
    acc_ref[...] = jnp.zeros_like(acc_ref)

    def head_body(h, carry):
        qh = q_ref[h]                                            # (tq, 3hd)
        kvh = kv_ref[h]                                          # (N, 3hd)
        q = qh[:, 0:head_dim].astype(jnp.float32) * scale        # (tq, hd)
        k = kvh[:, head_dim:2 * head_dim]                        # (N, hd)
        v = kvh[:, 2 * head_dim:3 * head_dim]                    # (N, hd)

        s = lax.dot_general(                                     # (tq, N)
            q, k.astype(jnp.float32),
            dimension_numbers=(((1,), (1,)), ((), ())),
            preferred_element_type=jnp.float32)
        s = s - jnp.max(s, axis=-1, keepdims=True)
        p = jnp.exp(s)
        denom = jnp.sum(p, axis=-1, keepdims=True)               # (tq, 1)

        ctx = lax.dot_general(                                   # (tq, hd)
            p.astype(v.dtype), v,
            dimension_numbers=(((1,), (0,)), ((), ())),
            preferred_element_type=jnp.float32)
        # Deferred softmax normalization: work scales with hd, not N.
        ctx = ctx * pl.reciprocal(denom, approx=approx_recip)

        acc_ref[...] += lax.dot_general(                         # (tq, C_out)
            ctx.astype(wp_ref.dtype), wp_ref[h],
            dimension_numbers=(((1,), (0,)), ((), ())),
            preferred_element_type=jnp.float32)
        return carry

    lax.fori_loop(0, num_heads, head_body, 0)
    o_ref[...] = (acc_ref[...] + b_ref[...].astype(jnp.float32)).astype(o_ref.dtype)


# ---------------------------------------------------------------------------
# Wrapper
# ---------------------------------------------------------------------------
def attention_forward(x, w_qkv, w_proj, b_proj, num_heads, *,
                      tm_target=512, tq_target=256):
    """Pallas implementation of Attention.forward (eval mode).

    x:      (B, N, C)
    w_qkv:  (3C, C)    PyTorch nn.Linear weight layout (out_features, in_features)
    w_proj: (C_out, C)
    b_proj: (C_out,)
    """
    B, N, C = x.shape
    H = num_heads
    assert C % H == 0, "C must be divisible by num_heads"
    hd = C // H
    scale = hd ** (-0.5)
    dtype = x.dtype
    c_out = w_proj.shape[0]
    isz = jnp.dtype(dtype).itemsize
    align = _sublane_align(dtype)
    approx_recip = bool(jnp.dtype(dtype) == jnp.dtype(jnp.bfloat16))

    M = B * N
    x_flat = x.reshape(M, C)

    # One-time weight relayouts (cheap O(C^2) XLA passes, amortized over every
    # grid step) so all in-kernel contractions are natural (M,K)x(K,N):
    #   w_qkv_h[h, c, s*hd + d] = w_qkv[s*C + h*hd + d, c]   -> (H, C, 3hd)
    #   w_proj_h[h, d, o]       = w_proj[o, h*hd + d]        -> (H, hd, C_out)
    w_qkv_h = jnp.transpose(w_qkv.reshape(3, H, hd, C), (1, 3, 0, 2)).reshape(H, C, 3 * hd)
    w_proj_h = jnp.transpose(w_proj.reshape(c_out, H, hd), (1, 2, 0))
    b2 = b_proj.reshape(1, c_out)

    # ------------- kernel 1: QKV projection (K = C, resident weight) -------------
    w1_bytes = H * C * 3 * hd * isz

    def k1_fits(tm_):
        blocks = 2 * (tm_ * C + H * tm_ * 3 * hd) * isz + 2 * w1_bytes
        temps = 4 * (tm_ * C + tm_ * 3 * hd)
        return blocks + temps <= _VMEM_FIT_BUDGET

    tm = _pick_row_tile(M, tm_target, align, k1_fits)
    grid1 = (pl.cdiv(M, tm),)

    qkv = pl.pallas_call(
        functools.partial(_qkv_proj_kernel, num_heads=H),
        out_shape=jax.ShapeDtypeStruct((H, M, 3 * hd), dtype),
        grid=grid1,
        in_specs=[
            pl.BlockSpec((tm, C), lambda i: (i, 0)),
            pl.BlockSpec((H, C, 3 * hd), lambda i: (0, 0, 0)),   # VMEM-resident weight
        ],
        out_specs=pl.BlockSpec((H, tm, 3 * hd), lambda i: (0, i, 0)),
        compiler_params=pltpu.CompilerParams(
            dimension_semantics=("parallel",),
            vmem_limit_bytes=_VMEM_LIMIT_BYTES,
        ),
        cost_estimate=pl.CostEstimate(
            flops=2 * M * C * 3 * C,
            transcendentals=0,
            bytes_accessed=(M * C + 3 * C * C + M * 3 * C) * isz,
        ),
    )(x_flat, w_qkv_h)

    # Free reshape (splits a leading dim): (H, M, 3hd) -> (H, B, N, 3hd).
    qkv = qkv.reshape(H, B, N, 3 * hd)

    # --------- kernel 2: fused MHA + output projection, query-tiled grid ---------
    kv_bytes = H * N * 3 * hd * isz
    wp_bytes = H * hd * c_out * isz

    def k2_fits(tq_):
        blocks = 2 * (H * tq_ * 3 * hd * isz + kv_bytes + wp_bytes
                      + c_out * isz + tq_ * c_out * isz)
        scratch = 4 * tq_ * c_out
        temps = 4 * (2 * tq_ * N + N * 3 * hd + tq_ * 3 * hd + tq_ * c_out)
        return blocks + scratch + temps <= _VMEM_FIT_BUDGET

    tq = _pick_row_tile(N, tq_target, align, k2_fits)
    grid2 = (B, pl.cdiv(N, tq))

    out = pl.pallas_call(
        functools.partial(_mha_proj_kernel, num_heads=H, head_dim=hd,
                          scale=scale, approx_recip=approx_recip),
        out_shape=jax.ShapeDtypeStruct((B, N, c_out), dtype),
        grid=grid2,
        in_specs=[
            # q window of this tile (head-major view of qkv)
            pl.BlockSpec((H, None, tq, 3 * hd), lambda b, qi: (0, b, qi, 0)),
            # full K/V slab for this batch element (constant in qi -> stays resident)
            pl.BlockSpec((H, None, N, 3 * hd), lambda b, qi: (0, b, 0, 0)),
            pl.BlockSpec((H, hd, c_out), lambda b, qi: (0, 0, 0)),
            pl.BlockSpec((1, c_out), lambda b, qi: (0, 0)),
        ],
        out_specs=pl.BlockSpec((None, tq, c_out), lambda b, qi: (b, qi, 0)),
        scratch_shapes=[pltpu.VMEM((tq, c_out), jnp.float32)],
        compiler_params=pltpu.CompilerParams(
            dimension_semantics=("parallel", "parallel"),
            vmem_limit_bytes=_VMEM_LIMIT_BYTES,
        ),
        cost_estimate=pl.CostEstimate(
            flops=4 * B * H * N * N * hd + 2 * B * N * C * c_out,
            transcendentals=B * H * N * N,
            bytes_accessed=(2 * B * N * 3 * C + H * hd * c_out + c_out + B * N * c_out) * isz,
        ),
    )(qkv, qkv, w_proj_h, b2)

    return out


# ---------------------------------------------------------------------------
# Pure-JAX reference (mirrors the PyTorch forward, eval mode)
# ---------------------------------------------------------------------------
def attention_reference(x, w_qkv, w_proj, b_proj, num_heads):
    B, N, C = x.shape
    H = num_heads
    hd = C // H
    scale = hd ** (-0.5)
    qkv = (x @ w_qkv.T).reshape(B, N, 3, H, hd)
    qkv = jnp.transpose(qkv, (2, 0, 3, 1, 4))
    q, k, v = qkv[0], qkv[1], qkv[2]
    attn = jnp.einsum("bhnd,bhmd->bhnm", q, k) * scale
    attn = jax.nn.softmax(attn, axis=-1)
    out = jnp.einsum("bhnm,bhmd->bhnd", attn, v)
    out = jnp.transpose(out, (0, 2, 1, 3)).reshape(B, N, C)
    return out @ w_proj.T + b_proj


if __name__ == "__main__":
    # Small shapes consistent with the module: B=2 sequences, N=8 tokens,
    # C=32 channels, 8 heads (head_dim=4).
    B, N, C, H = 2, 8, 32, 8

    key = jax.random.PRNGKey(0)
    k_x, k_qkv, k_proj_w, k_proj_b = jax.random.split(key, 4)

    x = jax.random.normal(k_x, (B, N, C), dtype=jnp.float32)

    # Deterministic parameter init (Kaiming-uniform-ish bounds like nn.Linear defaults).
    bound = 1.0 / math.sqrt(C)
    w_qkv = jax.random.uniform(k_qkv, (3 * C, C), jnp.float32, -bound, bound)
    w_proj = jax.random.uniform(k_proj_w, (C, C), jnp.float32, -bound, bound)
    b_proj = jax.random.uniform(k_proj_b, (C,), jnp.float32, -bound, bound)

    out = attention_forward(x, w_qkv, w_proj, b_proj, num_heads=H)
    out = jax.block_until_ready(out)

    ref = attention_reference(x, w_qkv, w_proj, b_proj, num_heads=H)
    assert out.shape == (B, N, C)
    assert jnp.allclose(out, ref, atol=1e-4, rtol=1e-4), "mismatch vs reference"

    print("KERNEL_OK")
</pallas_src>

<mosaic_0001>
module attributes {stable_mosaic.version = 11 : i64} {
  func.func @_qkv_proj_kernel(%arg0: i32, %arg1: memref<16x32xf32, #tpu.memory_space<vmem>>, %arg2: memref<8x32x12xf32, #tpu.memory_space<vmem>>, %arg3: memref<8x16x12xf32, #tpu.memory_space<vmem>>) attributes {dimension_semantics = [#tpu.dimension_semantics<parallel>], iteration_bounds = array<i64: 1>, scalar_prefetch = 0 : i64, scratch_operands = 0 : i64, tpu.core_type = #tpu.core_type<tc>, window_params = [{transform_indices = @transform_0, window_bounds = array<i64: 16, 32>}, {pipeline_mode = #tpu.pipeline_mode<synchronous>, transform_indices = @transform_1, window_bounds = array<i64: 8, 32, 12>}, {transform_indices = @transform_2, window_bounds = array<i64: 8, 16, 12>}]} {
    %c0 = arith.constant 0 : index
    %c0_0 = arith.constant 0 : index
    %0 = vector.load %arg1[%c0, %c0_0] : memref<16x32xf32, #tpu.memory_space<vmem>>, vector<16x32xf32>
    %c0_1 = arith.constant 0 : index
    %c0_2 = arith.constant 0 : index
    %c0_3 = arith.constant 0 : index
    %1 = vector.load %arg2[%c0_1, %c0_2, %c0_3] : memref<8x32x12xf32, #tpu.memory_space<vmem>>, vector<1x32x12xf32>
    %2 = vector.shape_cast %1 : vector<1x32x12xf32> to vector<32x12xf32>
    %cst = arith.constant dense<0.000000e+00> : vector<16x12xf32>
    %3 = tpu.matmul %0, %2, %cst {dimension_numbers = #tpu.dot_dimension_numbers<[1], [0], [0], [1], [0, 0, 1, 1], [], []>} : vector<16x32xf32>, vector<32x12xf32>, vector<16x12xf32> -> vector<16x12xf32>
    %c0_4 = arith.constant 0 : index
    %c0_5 = arith.constant 0 : index
    %c0_6 = arith.constant 0 : index
    %4 = vector.load %arg3[%c0_4, %c0_5, %c0_6] : memref<8x16x12xf32, #tpu.memory_space<vmem>>, vector<1x16x12xf32>
    %5 = vector.shape_cast %4 : vector<1x16x12xf32> to vector<16x12xf32>
    %6 = vector.shape_cast %3 : vector<16x12xf32> to vector<1x16x12xf32>
    tpu.vector_store %arg3[%c0_4, %c0_5, %c0_6], %6 {strides = array<i32>} : memref<8x16x12xf32, #tpu.memory_space<vmem>>, vector<1x16x12xf32>,
    %c1 = arith.constant 1 : index
    %c0_7 = arith.constant 0 : index
    %c0_8 = arith.constant 0 : index
    %7 = vector.load %arg2[%c1, %c0_7, %c0_8] : memref<8x32x12xf32, #tpu.memory_space<vmem>>, vector<1x32x12xf32>
    %8 = vector.shape_cast %7 : vector<1x32x12xf32> to vector<32x12xf32>
    %cst_9 = arith.constant dense<0.000000e+00> : vector<16x12xf32>
    %9 = tpu.matmul %0, %8, %cst_9 {dimension_numbers = #tpu.dot_dimension_numbers<[1], [0], [0], [1], [0, 0, 1, 1], [], []>} : vector<16x32xf32>, vector<32x12xf32>, vector<16x12xf32> -> vector<16x12xf32>
    %c1_10 = arith.constant 1 : index
    %c0_11 = arith.constant 0 : index
    %c0_12 = arith.constant 0 : index
    %10 = vector.load %arg3[%c1_10, %c0_11, %c0_12] : memref<8x16x12xf32, #tpu.memory_space<vmem>>, vector<1x16x12xf32>
    %11 = vector.shape_cast %10 : vector<1x16x12xf32> to vector<16x12xf32>
    %12 = vector.shape_cast %9 : vector<16x12xf32> to vector<1x16x12xf32>
    tpu.vector_store %arg3[%c1_10, %c0_11, %c0_12], %12 {strides = array<i32>} : memref<8x16x12xf32, #tpu.memory_space<vmem>>, vector<1x16x12xf32>,
    %c2 = arith.constant 2 : index
    %c0_13 = arith.constant 0 : index
    %c0_14 = arith.constant 0 : index
    %13 = vector.load %arg2[%c2, %c0_13, %c0_14] : memref<8x32x12xf32, #tpu.memory_space<vmem>>, vector<1x32x12xf32>
    %14 = vector.shape_cast %13 : vector<1x32x12xf32> to vector<32x12xf32>
    %cst_15 = arith.constant dense<0.000000e+00> : vector<16x12xf32>
    %15 = tpu.matmul %0, %14, %cst_15 {dimension_numbers = #tpu.dot_dimension_numbers<[1], [0], [0], [1], [0, 0, 1, 1], [], []>} : vector<16x32xf32>, vector<32x12xf32>, vector<16x12xf32> -> vector<16x12xf32>
    %c2_16 = arith.constant 2 : index
    %c0_17 = arith.constant 0 : index
    %c0_18 = arith.constant 0 : index
    %16 = vector.load %arg3[%c2_16, %c0_17, %c0_18] : memref<8x16x12xf32, #tpu.memory_space<vmem>>, vector<1x16x12xf32>
    %17 = vector.shape_cast %16 : vector<1x16x12xf32> to vector<16x12xf32>
    %18 = vector.shape_cast %15 : vector<16x12xf32> to vector<1x16x12xf32>
    tpu.vector_store %arg3[%c2_16, %c0_17, %c0_18], %18 {strides = array<i32>} : memref<8x16x12xf32, #tpu.memory_space<vmem>>, vector<1x16x12xf32>,
    %c3 = arith.constant 3 : index
    %c0_19 = arith.constant 0 : index
    %c0_20 = arith.constant 0 : index
    %19 = vector.load %arg2[%c3, %c0_19, %c0_20] : memref<8x32x12xf32, #tpu.memory_space<vmem>>, vector<1x32x12xf32>
    %20 = vector.shape_cast %19 : vector<1x32x12xf32> to vector<32x12xf32>
    %cst_21 = arith.constant dense<0.000000e+00> : vector<16x12xf32>
    %21 = tpu.matmul %0, %20, %cst_21 {dimension_numbers = #tpu.dot_dimension_numbers<[1], [0], [0], [1], [0, 0, 1, 1], [], []>} : vector<16x32xf32>, vector<32x12xf32>, vector<16x12xf32> -> vector<16x12xf32>
    %c3_22 = arith.constant 3 : index
    %c0_23 = arith.constant 0 : index
    %c0_24 = arith.constant 0 : index
    %22 = vector.load %arg3[%c3_22, %c0_23, %c0_24] : memref<8x16x12xf32, #tpu.memory_space<vmem>>, vector<1x16x12xf32>
    %23 = vector.shape_cast %22 : vector<1x16x12xf32> to vector<16x12xf32>
    %24 = vector.shape_cast %21 : vector<16x12xf32> to vector<1x16x12xf32>
    tpu.vector_store %arg3[%c3_22, %c0_23, %c0_24], %24 {strides = array<i32>} : memref<8x16x12xf32, #tpu.memory_space<vmem>>, vector<1x16x12xf32>,
    %c4 = arith.constant 4 : index
    %c0_25 = arith.constant 0 : index
    %c0_26 = arith.constant 0 : index
    %25 = vector.load %arg2[%c4, %c0_25, %c0_26] : memref<8x32x12xf32, #tpu.memory_space<vmem>>, vector<1x32x12xf32>
    %26 = vector.shape_cast %25 : vector<1x32x12xf32> to vector<32x12xf32>
    %cst_27 = arith.constant dense<0.000000e+00> : vector<16x12xf32>
    %27 = tpu.matmul %0, %26, %cst_27 {dimension_numbers = #tpu.dot_dimension_numbers<[1], [0], [0], [1], [0, 0, 1, 1], [], []>} : vector<16x32xf32>, vector<32x12xf32>, vector<16x12xf32> -> vector<16x12xf32>
    %c4_28 = arith.constant 4 : index
    %c0_29 = arith.constant 0 : index
    %c0_30 = arith.constant 0 : index
    %28 = vector.load %arg3[%c4_28, %c0_29, %c0_30] : memref<8x16x12xf32, #tpu.memory_space<vmem>>, vector<1x16x12xf32>
    %29 = vector.shape_cast %28 : vector<1x16x12xf32> to vector<16x12xf32>
    %30 = vector.shape_cast %27 : vector<16x12xf32> to vector<1x16x12xf32>
    tpu.vector_store %arg3[%c4_28, %c0_29, %c0_30], %30 {strides = array<i32>} : memref<8x16x12xf32, #tpu.memory_space<vmem>>, vector<1x16x12xf32>,
    %c5 = arith.constant 5 : index
    %c0_31 = arith.constant 0 : index
    %c0_32 = arith.constant 0 : index
    %31 = vector.load %arg2[%c5, %c0_31, %c0_32] : memref<8x32x12xf32, #tpu.memory_space<vmem>>, vector<1x32x12xf32>
    %32 = vector.shape_cast %31 : vector<1x32x12xf32> to vector<32x12xf32>
    %cst_33 = arith.constant dense<0.000000e+00> : vector<16x12xf32>
    %33 = tpu.matmul %0, %32, %cst_33 {dimension_numbers = #tpu.dot_dimension_numbers<[1], [0], [0], [1], [0, 0, 1, 1], [], []>} : vector<16x32xf32>, vector<32x12xf32>, vector<16x12xf32> -> vector<16x12xf32>
    %c5_34 = arith.constant 5 : index
    %c0_35 = arith.constant 0 : index
    %c0_36 = arith.constant 0 : index
    %34 = vector.load %arg3[%c5_34, %c0_35, %c0_36] : memref<8x16x12xf32, #tpu.memory_space<vmem>>, vector<1x16x12xf32>
    %35 = vector.shape_cast %34 : vector<1x16x12xf32> to vector<16x12xf32>
    %36 = vector.shape_cast %33 : vector<16x12xf32> to vector<1x16x12xf32>
    tpu.vector_store %arg3[%c5_34, %c0_35, %c0_36], %36 {strides = array<i32>} : memref<8x16x12xf32, #tpu.memory_space<vmem>>, vector<1x16x12xf32>,
    %c6 = arith.constant 6 : index
    %c0_37 = arith.constant 0 : index
    %c0_38 = arith.constant 0 : index
    %37 = vector.load %arg2[%c6, %c0_37, %c0_38] : memref<8x32x12xf32, #tpu.memory_space<vmem>>, vector<1x32x12xf32>
    %38 = vector.shape_cast %37 : vector<1x32x12xf32> to vector<32x12xf32>
    %cst_39 = arith.constant dense<0.000000e+00> : vector<16x12xf32>
    %39 = tpu.matmul %0, %38, %cst_39 {dimension_numbers = #tpu.dot_dimension_numbers<[1], [0], [0], [1], [0, 0, 1, 1], [], []>} : vector<16x32xf32>, vector<32x12xf32>, vector<16x12xf32> -> vector<16x12xf32>
    %c6_40 = arith.constant 6 : index
    %c0_41 = arith.constant 0 : index
    %c0_42 = arith.constant 0 : index
    %40 = vector.load %arg3[%c6_40, %c0_41, %c0_42] : memref<8x16x12xf32, #tpu.memory_space<vmem>>, vector<1x16x12xf32>
    %41 = vector.shape_cast %40 : vector<1x16x12xf32> to vector<16x12xf32>
    %42 = vector.shape_cast %39 : vector<16x12xf32> to vector<1x16x12xf32>
    tpu.vector_store %arg3[%c6_40, %c0_41, %c0_42], %42 {strides = array<i32>} : memref<8x16x12xf32, #tpu.memory_space<vmem>>, vector<1x16x12xf32>,
    %c7 = arith.constant 7 : index
    %c0_43 = arith.constant 0 : index
    %c0_44 = arith.constant 0 : index
    %43 = vector.load %arg2[%c7, %c0_43, %c0_44] : memref<8x32x12xf32, #tpu.memory_space<vmem>>, vector<1x32x12xf32>
    %44 = vector.shape_cast %43 : vector<1x32x12xf32> to vector<32x12xf32>
    %cst_45 = arith.constant dense<0.000000e+00> : vector<16x12xf32>
    %45 = tpu.matmul %0, %44, %cst_45 {dimension_numbers = #tpu.dot_dimension_numbers<[1], [0], [0], [1], [0, 0, 1, 1], [], []>} : vector<16x32xf32>, vector<32x12xf32>, vector<16x12xf32> -> vector<16x12xf32>
    %c7_46 = arith.constant 7 : index
    %c0_47 = arith.constant 0 : index
    %c0_48 = arith.constant 0 : index
    %46 = vector.load %arg3[%c7_46, %c0_47, %c0_48] : memref<8x16x12xf32, #tpu.memory_space<vmem>>, vector<1x16x12xf32>
    %47 = vector.shape_cast %46 : vector<1x16x12xf32> to vector<16x12xf32>
    %48 = vector.shape_cast %45 : vector<16x12xf32> to vector<1x16x12xf32>
    tpu.vector_store %arg3[%c7_46, %c0_47, %c0_48], %48 {strides = array<i32>} : memref<8x16x12xf32, #tpu.memory_space<vmem>>, vector<1x16x12xf32>,
    return
  }
  func.func @transform_0(%arg0: i32) -> (i32, i32) {
    %c0_i32 = arith.constant 0 : i32
    %c0_i32_0 = arith.constant 0 : i32
    return %arg0, %c0_i32 : i32, i32
  }
  func.func @transform_1(%arg0: i32) -> (i32, i32, i32) {
    %c0_i32 = arith.constant 0 : i32
    %c0_i32_0 = arith.constant 0 : i32
    %c0_i32_1 = arith.constant 0 : i32
    %c0_i32_2 = arith.constant 0 : i32
    return %c0_i32, %c0_i32_0, %c0_i32_1 : i32, i32, i32
  }
  func.func @transform_2(%arg0: i32) -> (i32, i32, i32) {
    %c0_i32 = arith.constant 0 : i32
    %c0_i32_0 = arith.constant 0 : i32
    %c0_i32_1 = arith.constant 0 : i32
    return %c0_i32, %arg0, %c0_i32_0 : i32, i32, i32
  }
}

</mosaic_0001>

<bundles_post_ra>
// kernel: tpu_custom_call.1
= control target key start
LH: loop header
LB: loop body
LE: loop exit
PB: predicated region body
PF: predicated region fallthrough
CT: control target
= control target key end

     0   :  { %vm17_vm0 = vcmask 261120   ;;  %vm99_vm1 = vcmask 97280   ;;  %s1162_s1 = inlined_call_operand.vmem [shape: f32[8,32,12], index: 1, kind: input, shape index: {}]   ;;  %s1163_s0 = inlined_call_operand.vmem [shape: f32[16,32], index: 0, kind: input, shape index: {}]   ;;  %s1164_s2 = inlined_call_operand.vmem [shape: f32[8,16,12], index: 2, kind: output, shape index: {}]  }
   0x1   :  { %v13_v0 = vld [vmem:[%s1162_s1] sm:$0xff]  ;;  %v14_v1 = vld [vmem:[%s1162_s1 + $0x8] sm:$0xff]  ;;  %v15_v5 = vld [vmem:[%s1162_s1 + $0x10] sm:$0xff] }
   0x2   :  { %v689_v2 = vld [vmem:[%s1162_s1 + $0x20] sm:$0xff]  ;;  %v881_v3 = vpack.c.bf16 %v14_v1, %v13_v0  ;;  %v690_v4 = vld [vmem:[%s1162_s1 + $0x28] sm:$0xff]  ;;  %v16_v6 = vld [vmem:[%s1162_s1 + $0x18] sm:$0xff] }
   0x3   :  { %v889_v7 = vpack.c.bf16 %v690_v4, %v689_v2  ;;  %v885_v8 = vpack.c.bf16 %v16_v6, %v15_v5  ;;  %v691_v9 = vld [vmem:[%s1162_s1 + $0x30] sm:$0xff]  ;;  %v692_v10 = vld [vmem:[%s1162_s1 + $0x38] sm:$0xff]  ;;  %v987_v11 = vld [vmem:[%s1163_s0] sm:$0xff] }
   0x4   :  { %882 = vmatprep.subr.bf16.mxu0 %v881_v3  ;;  %v893_v12 = vpack.c.bf16 %v692_v10, %v691_v9  ;;  %801 = vmatprep.mubr.msk.f32.mxu0 %vm17_vm0, %v987_v11  ;;  %v697_v13 = vld [vmem:[%s1162_s1 + $0x40] sm:$0xff]  ;;  %v698_v14 = vld [vmem:[%s1162_s1 + $0x48] sm:$0xff]  ;;  %v699_v19 = vld [vmem:[%s1162_s1 + $0x50] sm:$0xff] }
   0x5   :  { %890 = vmatprep.subr.bf16.mxu1 %v889_v7  ;;  %884 = vmatpush3.bf16.msra.mxu0 %v881_v3  ;;  %v705_v15 = vld [vmem:[%s1162_s1 + $0x60] sm:$0xff]  ;;  %v706_v16 = vld [vmem:[%s1162_s1 + $0x68] sm:$0xff]  ;;  %v897_v17 = vpack.c.bf16 %v698_v14, %v697_v13  ;;  %v700_v20 = vld [vmem:[%s1162_s1 + $0x58] sm:$0xff] }
   0x6   :  { %892 = vmatpush3.bf16.msra.mxu1 %v889_v7  ;;  %886 = vmatprep.subr.bf16.mxu0 %v885_v8  ;;  %v905_v18 = vpack.c.bf16 %v706_v16, %v705_v15  ;;  %v707_v21 = vld [vmem:[%s1162_s1 + $0x70] sm:$0xff]  ;;  %v708_v22 = vld [vmem:[%s1162_s1 + $0x78] sm:$0xff]  ;;  %v1020_v23 = vld [vmem:[%s1163_s0 + $0x8] sm:$0xff]  ;;  %v901_v24 = vpack.c.bf16 %v700_v20, %v699_v19 }
   0x7   :  { %894 = vmatprep.subr.bf16.mxu1 %v893_v12  ;;  %812 = vmatprep.mubr.msk.f32.mxu1 %vm17_vm0, %v987_v11  ;;  %v909_v25 = vpack.c.bf16 %v708_v22, %v707_v21  ;;  %v713_v26 = vld [vmem:[%s1162_s1 + $0x80] sm:$0xff]  ;;  %v714_v27 = vld [vmem:[%s1162_s1 + $0x88] sm:$0xff]  ;;  %v715_v32 = vld [vmem:[%s1162_s1 + $0x90] sm:$0xff] }
   0x8   :  { %v721_v28 = vld [vmem:[%s1162_s1 + $0xa0] sm:$0xff]  ;;  %v722_v29 = vld [vmem:[%s1162_s1 + $0xa8] sm:$0xff]  ;;  %v913_v30 = vpack.c.bf16 %v714_v27, %v713_v26  ;;  %v716_v33 = vld [vmem:[%s1162_s1 + $0x98] sm:$0xff] }
   0x9   :  { %888 = vmatpush3.bf16.msra.mxu0 %v885_v8  ;;  %v921_v31 = vpack.c.bf16 %v722_v29, %v721_v28  ;;  %v723_v34 = vld [vmem:[%s1162_s1 + $0xb0] sm:$0xff]  ;;  %v724_v35 = vld [vmem:[%s1162_s1 + $0xb8] sm:$0xff]  ;;  %v917_v36 = vpack.c.bf16 %v716_v33, %v715_v32  ;;  %v729_v38 = vld [vmem:[%s1162_s1 + $0xc0] sm:$0xff] }
   0xa   :  { %896 = vmatpush3.bf16.msra.mxu1 %v893_v12  ;;  %898 = vmatprep.subr.bf16.mxu0 %v897_v17  ;;  %v925_v37 = vpack.c.bf16 %v724_v35, %v723_v34  ;;  %v730_v39 = vld [vmem:[%s1162_s1 + $0xc8] sm:$0xff]  ;;  %v737_v40 = vld [vmem:[%s1162_s1 + $0xe0] sm:$0xff]  ;;  %v731_v44 = vld [vmem:[%s1162_s1 + $0xd0] sm:$0xff] }
   0xb   :  { %906 = vmatprep.subr.bf16.mxu1 %v905_v18  ;;  %v738_v41 = vld [vmem:[%s1162_s1 + $0xe8] sm:$0xff]  ;;  %v929_v42 = vpack.c.bf16 %v730_v39, %v729_v38  ;;  %v732_v45 = vld [vmem:[%s1162_s1 + $0xd8] sm:$0xff]  ;;  %v739_v46 = vld [vmem:[%s1162_s1 + $0xf0] sm:$0xff] }
   0xc   :  { %802 = vmatmul.mubr.msk.f32.vlgmr.msra.gmra.mrb[0].mxu0 %vm17_vm0, %v1020_v23  ;;  %v937_v43 = vpack.c.bf16 %v738_v41, %v737_v40  ;;  %v740_v47 = vld [vmem:[%s1162_s1 + $0xf8] sm:$0xff]  ;;  %v933_v48 = vpack.c.bf16 %v732_v45, %v731_v44 }
   0xd   :  { %813 = vmatmul.mubr.msk.f32.vlgmr.msra.gmra.mrb[0].mxu1 %vm17_vm0, %v1020_v23  ;;  %900 = vmatpush3.bf16.msra.mxu0 %v897_v17  ;;  %v941_v49 = vpack.c.bf16 %v740_v47, %v739_v46 }
   0xe   :  { %908 = vmatpush3.bf16.msra.mxu1 %v905_v18  ;;  %902 = vmatprep.subr.bf16.mxu0 %v901_v24 }
   0xf   :  { %910 = vmatprep.subr.bf16.mxu1 %v909_v25  ;;  %823 = vmatprep.mubr.msk.f32.mxu0 %vm17_vm0, %v987_v11 }
  0x10   :  { %834 = vmatprep.mubr.msk.f32.mxu1 %vm17_vm0, %v987_v11 }
  0x11   :  { %904 = vmatpush3.bf16.msra.mxu0 %v901_v24 }
  0x12   :  { %912 = vmatpush3.bf16.msra.mxu1 %v909_v25  ;;  %914 = vmatprep.subr.bf16.mxu0 %v913_v30 }
  0x13   :  { %922 = vmatprep.subr.bf16.mxu1 %v921_v31 }
  0x14   :  { %824 = vmatmul.mubr.msk.f32.vlgmr.msra.gmra.mrb[2].mxu0 %vm17_vm0, %v1020_v23 }
  0x15   :  { %835 = vmatmul.mubr.msk.f32.vlgmr.msra.gmra.mrb[2].mxu1 %vm17_vm0, %v1020_v23  ;;  %916 = vmatpush3.bf16.msra.mxu0 %v913_v30 }
  0x16   :  { %924 = vmatpush3.bf16.msra.mxu1 %v921_v31  ;;  %918 = vmatprep.subr.bf16.mxu0 %v917_v36 }
  0x17   :  { %926 = vmatprep.subr.bf16.mxu1 %v925_v37  ;;  %845 = vmatprep.mubr.msk.f32.mxu0 %vm17_vm0, %v987_v11 }
  0x18   :  { %856 = vmatprep.mubr.msk.f32.mxu1 %vm17_vm0, %v987_v11 }
  0x19   :  { %920 = vmatpush3.bf16.msra.mxu0 %v917_v36 }
  0x1a   :  { %928 = vmatpush3.bf16.msra.mxu1 %v925_v37  ;;  %930 = vmatprep.subr.bf16.mxu0 %v929_v42 }
  0x1b   :  { %938 = vmatprep.subr.bf16.mxu1 %v937_v43 }
  0x1c   :  { %846 = vmatmul.mubr.msk.f32.vlgmr.msra.gmra.mrb[4].mxu0 %vm17_vm0, %v1020_v23 }
  0x1d   :  { %857 = vmatmul.mubr.msk.f32.vlgmr.msra.gmra.mrb[4].mxu1 %vm17_vm0, %v1020_v23  ;;  %932 = vmatpush3.bf16.msra.mxu0 %v929_v42 }
  0x1e   :  { %940 = vmatpush3.bf16.msra.mxu1 %v937_v43  ;;  %934 = vmatprep.subr.bf16.mxu0 %v933_v48 }
  0x1f   :  { %942 = vmatprep.subr.bf16.mxu1 %v941_v49  ;;  %867 = vmatprep.mubr.msk.f32.mxu0 %vm17_vm0, %v987_v11 }
  0x20   :  { %878 = vmatprep.mubr.msk.f32.mxu1 %vm17_vm0, %v987_v11 }
  0x21   :  { %936 = vmatpush3.bf16.msra.mxu0 %v933_v48 }
  0x22   :  { %944 = vmatpush3.bf16.msra.mxu1 %v941_v49 }
  0x24   :  { %868 = vmatmul.mubr.msk.f32.vlgmr.msra.gmra.mrb[6].mxu0 %vm17_vm0, %v1020_v23 }
  0x25   :  { %879 = vmatmul.mubr.msk.f32.vlgmr.msra.gmra.mrb[6].mxu1 %vm17_vm0, %v1020_v23 }
  0xdf   :  { %v803_v50 = vpop.f32.mrb[0].mxu0 }
  0xe0   :  { %101 = vst.msk [vmem:[%s1164_s2 + $0x8] sm:$0xff] %vm99_vm1, %v803_v50  ;;  %v814_v51 = vpop.f32.mrb[0].mxu1  ;;  %v90_v52 = vpop.f32.mrb[1].mxu0 }
  0xe1   :  { %696 = vst.msk [vmem:[%s1164_s2 + $0x18] sm:$0xff] %vm99_vm1, %v814_v51  ;;  %100 = vst.msk [vmem:[%s1164_s2] sm:$0xff] %vm99_vm1, %v90_v52  ;;  %v173_v53 = vpop.f32.mrb[1].mxu1 }
  0xe2   :  { %695 = vst.msk [vmem:[%s1164_s2 + $0x10] sm:$0xff] %vm99_vm1, %v173_v53 }
  0xe7   :  { %v825_v54 = vpop.f32.mrb[2].mxu0 }
  0xe8   :  { %704 = vst.msk [vmem:[%s1164_s2 + $0x28] sm:$0xff] %vm99_vm1, %v825_v54  ;;  %v836_v55 = vpop.f32.mrb[2].mxu1  ;;  %v256_v56 = vpop.f32.mrb[3].mxu0 }
  0xe9   :  { %712 = vst.msk [vmem:[%s1164_s2 + $0x38] sm:$0xff] %vm99_vm1, %v836_v55  ;;  %703 = vst.msk [vmem:[%s1164_s2 + $0x20] sm:$0xff] %vm99_vm1, %v256_v56  ;;  %v339_v57 = vpop.f32.mrb[3].mxu1 }
  0xea   :  { %711 = vst.msk [vmem:[%s1164_s2 + $0x30] sm:$0xff] %vm99_vm1, %v339_v57 }
  0xef   :  { %v847_v58 = vpop.f32.mrb[4].mxu0 }
  0xf0   :  { %720 = vst.msk [vmem:[%s1164_s2 + $0x48] sm:$0xff] %vm99_vm1, %v847_v58  ;;  %v858_v59 = vpop.f32.mrb[4].mxu1  ;;  %v422_v60 = vpop.f32.mrb[5].mxu0 }
  0xf1   :  { %728 = vst.msk [vmem:[%s1164_s2 + $0x58] sm:$0xff] %vm99_vm1, %v858_v59  ;;  %719 = vst.msk [vmem:[%s1164_s2 + $0x40] sm:$0xff] %vm99_vm1, %v422_v60  ;;  %v505_v61 = vpop.f32.mrb[5].mxu1 }
  0xf2   :  { %727 = vst.msk [vmem:[%s1164_s2 + $0x50] sm:$0xff] %vm99_vm1, %v505_v61 }
  0xf7   :  { %v869_v62 = vpop.f32.mrb[6].mxu0 }
  0xf8   :  { %736 = vst.msk [vmem:[%s1164_s2 + $0x68] sm:$0xff] %vm99_vm1, %v869_v62  ;;  %v880_v63 = vpop.f32.mrb[6].mxu1  ;;  %v588_v0 = vpop.f32.mrb[7].mxu0 }
  0xf9   :  { %744 = vst.msk [vmem:[%s1164_s2 + $0x78] sm:$0xff] %vm99_vm1, %v880_v63  ;;  %735 = vst.msk [vmem:[%s1164_s2 + $0x60] sm:$0xff] %vm99_vm1, %v588_v0  ;;  %v671_v1 = vpop.f32.mrb[7].mxu1 }
  0xfa   :  { %743 = vst.msk [vmem:[%s1164_s2 + $0x70] sm:$0xff] %vm99_vm1, %v671_v1 }

</bundles_post_ra>
